<compile_context>
chip_gen: v5e
topology: v5e:2x2
jax: 0.10.0
libtpu: 0.0.40
codegen_flags: <defaults>
</compile_context>

<pallas_src>
import jax
import jax.numpy as jnp
from jax.experimental import pallas as pl
from jax.experimental.pallas import tpu as pltpu


_TB_MAX = 4096   # max batch-tile rows (fits comfortably in default scoped VMEM on all gens)


def _round_up(x, m):
    return ((x + m - 1) // m) * m


def _cdiv(a, b):
    return (a + b - 1) // b


def _choose_tiles(batch):
    """Pick (tile_rows, n_tiles). At least 2 tiles so v7x's two TCs both get work,
    except for tiny batches where a second tile would be pure padding."""
    if batch <= 8:
        return 8, 1
    n_tiles = 2 * _cdiv(batch, 2 * _TB_MAX)
    tb = _round_up(_cdiv(batch, n_tiles), 8)
    return tb, n_tiles


def _qnet_kernel(x_ref, w1_ref, b1_ref, w2_ref, b2_ref, w3t_ref, b3_ref, out_ref):
    x = x_ref[...]                       # (TB, S)  f32
    w1 = w1_ref[...]                     # (S, 64)  f32
    s_dim = x_ref.shape[1]

    # ---- fc1 on the VPU (K = state_space is tiny): unrolled broadcast MACs, f32. ----
    acc1 = x[:, 0:1] * w1[0:1, :]
    for k in range(1, s_dim):
        acc1 = acc1 + x[:, k:k + 1] * w1[k:k + 1, :]
    h1 = jnp.maximum(acc1 + b1_ref[...], 0.0)            # (TB, 64) f32

    # ---- fc2 on the MXU (64x32): bf16 operands, f32 accumulation. ----
    h2 = jnp.dot(h1.astype(jnp.bfloat16), w2_ref[...],
                 preferred_element_type=jnp.float32) + b2_ref[...]
    h2 = jnp.maximum(h2, 0.0)                            # (TB, 32) f32

    # ---- fc3 on the VPU/XLU (N = action_space is tiny): per-action lane reduction, f32. ----
    w3t = w3t_ref[...]                                   # (A, 32) f32  (pre-transposed)
    a_dim = w3t_ref.shape[0]
    cols = []
    for j in range(a_dim):
        wj = w3t[j:j + 1, :]                             # (1, 32) sublane-broadcast row
        cols.append(jnp.sum(h2 * wj, axis=-1, keepdims=True))   # (TB, 1)
    out = jnp.concatenate(cols, axis=-1) + b3_ref[...]   # (TB, A) f32
    out_ref[...] = out


def prepare_params(params):
    """One-time parameter prep (hoisted out of the per-call path)."""
    return {
        "w1": params["w1"].astype(jnp.float32),                 # (S, 64)
        "b1": params["b1"].reshape(1, -1).astype(jnp.float32),  # (1, 64)
        "w2": params["w2"].astype(jnp.bfloat16),                # (64, 32)  MXU operand
        "b2": params["b2"].reshape(1, -1).astype(jnp.float32),  # (1, 32)
        "w3t": params["w3"].T.astype(jnp.float32),              # (A, 32)  rows = actions
        "b3": params["b3"].reshape(1, -1).astype(jnp.float32),  # (1, A)
    }


def _qnet_forward_impl(state, prep):
    batch, state_space = state.shape
    hidden1 = prep["w1"].shape[1]        # 64
    hidden2 = prep["w2"].shape[1]        # 32
    action_space = prep["w3t"].shape[0]

    tb, n_tiles = _choose_tiles(batch)
    padded_b = tb * n_tiles
    x = state
    if padded_b != batch:
        x = jnp.pad(x, ((0, padded_b - batch), (0, 0)))

    const = lambda i: (0, 0)   # weights/biases resident across all grid steps (~11 KB)

    flops = 2 * padded_b * (state_space * hidden1 + hidden1 * hidden2
                            + hidden2 * action_space)
    bytes_accessed = 4 * (padded_b * (state_space + action_space)
                          + state_space * hidden1 + hidden1 * hidden2
                          + hidden2 * action_space
                          + hidden1 + hidden2 + action_space)

    out = pl.pallas_call(
        _qnet_kernel,
        out_shape=jax.ShapeDtypeStruct((padded_b, action_space), jnp.float32),
        grid=(n_tiles,),
        in_specs=[
            pl.BlockSpec((tb, state_space), lambda i: (i, 0)),   # state: tiled over batch
            pl.BlockSpec((state_space, hidden1), const),         # w1
            pl.BlockSpec((1, hidden1), const),                   # b1
            pl.BlockSpec((hidden1, hidden2), const),             # w2 (bf16)
            pl.BlockSpec((1, hidden2), const),                   # b2
            pl.BlockSpec((action_space, hidden2), const),        # w3^T
            pl.BlockSpec((1, action_space), const),              # b3
        ],
        # Compact output block: last dim == full array dim (action_space), so the
        # writeback DMA moves only 4 * A bytes per row.
        out_specs=pl.BlockSpec((tb, action_space), lambda i: (i, 0)),
        compiler_params=pltpu.CompilerParams(
            dimension_semantics=("parallel",),   # megacore sharding on v7x; no-op on v5e/v6e
        ),
        cost_estimate=pl.CostEstimate(
            flops=flops, transcendentals=0, bytes_accessed=bytes_accessed),
    )(x, prep["w1"], prep["b1"], prep["w2"], prep["b2"], prep["w3t"], prep["b3"])

    if padded_b != batch:
        out = out[:batch]
    return out


qnetwork_forward = jax.jit(_qnet_forward_impl)


def init_qnetwork_params(key, state_space, action_space):
    """Deterministic init mirroring nn.Linear's U(-1/sqrt(fan_in), 1/sqrt(fan_in)).

    Weights stored as [in, out] so the forward computes x @ W (== PyTorch x @ W.T).
    """
    dims = [(state_space, 64), (64, 32), (32, action_space)]
    params = {}
    for i, (fan_in, fan_out) in enumerate(dims, start=1):
        key, kw, kb = jax.random.split(key, 3)
        bound = 1.0 / jnp.sqrt(fan_in)
        params[f"w{i}"] = jax.random.uniform(
            kw, (fan_in, fan_out), jnp.float32, -bound, bound)
        params[f"b{i}"] = jax.random.uniform(
            kb, (1, fan_out), jnp.float32, -bound, bound)
    return params


def qnetwork_reference(state, params):
    """Pure-JAX f32 reference for correctness check."""
    h = jnp.maximum(state @ params["w1"] + params["b1"], 0.0)
    h = jnp.maximum(h @ params["w2"] + params["b2"], 0.0)
    return h @ params["w3"] + params["b3"]


if __name__ == "__main__":
    key = jax.random.PRNGKey(0)
    state_space = 8
    action_space = 4

    kp, kx1, kx2 = jax.random.split(key, 3)
    params = init_qnetwork_params(kp, state_space, action_space)
    prep = prepare_params(params)   # one-time weight prep (bf16 W2, W3^T, bias reshape)

    # Small canonical case (B=2) plus an uneven batch to exercise tiling/padding.
    for batch, kx in ((2, kx1), (33, kx2)):
        state = jax.random.normal(kx, (batch, state_space), jnp.float32)
        out = jax.block_until_ready(qnetwork_forward(state, prep))
        ref = qnetwork_reference(state, params)
        assert out.shape == (batch, action_space)
        # Only fc2 runs in bf16 (with f32 accumulation); fc1/fc3 are full f32.
        assert jnp.allclose(out, ref, atol=2e-2, rtol=2e-2), "mismatch vs reference"

    print("KERNEL_OK")
</pallas_src>

<mosaic_0001>
module attributes {stable_mosaic.version = 11 : i64} {
  func.func @_qnet_kernel(%arg0: i32, %arg1: memref<8x8xf32, #tpu.memory_space<vmem>>, %arg2: memref<8x64xf32, #tpu.memory_space<vmem>>, %arg3: memref<1x64xf32, #tpu.memory_space<vmem>>, %arg4: memref<64x32xbf16, #tpu.memory_space<vmem>>, %arg5: memref<1x32xf32, #tpu.memory_space<vmem>>, %arg6: memref<4x32xf32, #tpu.memory_space<vmem>>, %arg7: memref<1x4xf32, #tpu.memory_space<vmem>>, %arg8: memref<8x4xf32, #tpu.memory_space<vmem>>) attributes {dimension_semantics = [#tpu.dimension_semantics<parallel>], iteration_bounds = array<i64: 1>, scalar_prefetch = 0 : i64, scratch_operands = 0 : i64, tpu.core_type = #tpu.core_type<tc>, window_params = [{transform_indices = @transform_0, window_bounds = array<i64: 8, 8>}, {pipeline_mode = #tpu.pipeline_mode<synchronous>, transform_indices = @transform_1, window_bounds = array<i64: 8, 64>}, {pipeline_mode = #tpu.pipeline_mode<synchronous>, transform_indices = @transform_2, window_bounds = array<i64: 1, 64>}, {pipeline_mode = #tpu.pipeline_mode<synchronous>, transform_indices = @transform_3, window_bounds = array<i64: 64, 32>}, {pipeline_mode = #tpu.pipeline_mode<synchronous>, transform_indices = @transform_4, window_bounds = array<i64: 1, 32>}, {pipeline_mode = #tpu.pipeline_mode<synchronous>, transform_indices = @transform_5, window_bounds = array<i64: 4, 32>}, {pipeline_mode = #tpu.pipeline_mode<synchronous>, transform_indices = @transform_6, window_bounds = array<i64: 1, 4>}, {transform_indices = @transform_7, window_bounds = array<i64: 8, 4>}]} {
    %c0 = arith.constant 0 : index
    %c0_0 = arith.constant 0 : index
    %0 = vector.load %arg1[%c0, %c0_0] : memref<8x8xf32, #tpu.memory_space<vmem>>, vector<8x8xf32>
    %c0_1 = arith.constant 0 : index
    %c0_2 = arith.constant 0 : index
    %1 = vector.load %arg2[%c0_1, %c0_2] : memref<8x64xf32, #tpu.memory_space<vmem>>, vector<8x64xf32>
    %2 = vector.extract_strided_slice %0 {offsets = [0, 0], sizes = [8, 1], strides = [1, 1]} : vector<8x8xf32> to vector<8x1xf32>
    %3 = vector.extract_strided_slice %1 {offsets = [0, 0], sizes = [1, 64], strides = [1, 1]} : vector<8x64xf32> to vector<1x64xf32>
    %4 = vector.broadcast %2 : vector<8x1xf32> to vector<8x64xf32>
    %5 = vector.broadcast %3 : vector<1x64xf32> to vector<8x64xf32>
    %6 = arith.mulf %4, %5 : vector<8x64xf32>
    %7 = vector.extract_strided_slice %0 {offsets = [0, 1], sizes = [8, 1], strides = [1, 1]} : vector<8x8xf32> to vector<8x1xf32>
    %8 = vector.extract_strided_slice %1 {offsets = [1, 0], sizes = [1, 64], strides = [1, 1]} : vector<8x64xf32> to vector<1x64xf32>
    %9 = vector.broadcast %7 : vector<8x1xf32> to vector<8x64xf32>
    %10 = vector.broadcast %8 : vector<1x64xf32> to vector<8x64xf32>
    %11 = arith.mulf %9, %10 : vector<8x64xf32>
    %12 = arith.addf %6, %11 : vector<8x64xf32>
    %13 = vector.extract_strided_slice %0 {offsets = [0, 2], sizes = [8, 1], strides = [1, 1]} : vector<8x8xf32> to vector<8x1xf32>
    %14 = vector.extract_strided_slice %1 {offsets = [2, 0], sizes = [1, 64], strides = [1, 1]} : vector<8x64xf32> to vector<1x64xf32>
    %15 = vector.broadcast %13 : vector<8x1xf32> to vector<8x64xf32>
    %16 = vector.broadcast %14 : vector<1x64xf32> to vector<8x64xf32>
    %17 = arith.mulf %15, %16 : vector<8x64xf32>
    %18 = arith.addf %12, %17 : vector<8x64xf32>
    %19 = vector.extract_strided_slice %0 {offsets = [0, 3], sizes = [8, 1], strides = [1, 1]} : vector<8x8xf32> to vector<8x1xf32>
    %20 = vector.extract_strided_slice %1 {offsets = [3, 0], sizes = [1, 64], strides = [1, 1]} : vector<8x64xf32> to vector<1x64xf32>
    %21 = vector.broadcast %19 : vector<8x1xf32> to vector<8x64xf32>
    %22 = vector.broadcast %20 : vector<1x64xf32> to vector<8x64xf32>
    %23 = arith.mulf %21, %22 : vector<8x64xf32>
    %24 = arith.addf %18, %23 : vector<8x64xf32>
    %25 = vector.extract_strided_slice %0 {offsets = [0, 4], sizes = [8, 1], strides = [1, 1]} : vector<8x8xf32> to vector<8x1xf32>
    %26 = vector.extract_strided_slice %1 {offsets = [4, 0], sizes = [1, 64], strides = [1, 1]} : vector<8x64xf32> to vector<1x64xf32>
    %27 = vector.broadcast %25 : vector<8x1xf32> to vector<8x64xf32>
    %28 = vector.broadcast %26 : vector<1x64xf32> to vector<8x64xf32>
    %29 = arith.mulf %27, %28 : vector<8x64xf32>
    %30 = arith.addf %24, %29 : vector<8x64xf32>
    %31 = vector.extract_strided_slice %0 {offsets = [0, 5], sizes = [8, 1], strides = [1, 1]} : vector<8x8xf32> to vector<8x1xf32>
    %32 = vector.extract_strided_slice %1 {offsets = [5, 0], sizes = [1, 64], strides = [1, 1]} : vector<8x64xf32> to vector<1x64xf32>
    %33 = vector.broadcast %31 : vector<8x1xf32> to vector<8x64xf32>
    %34 = vector.broadcast %32 : vector<1x64xf32> to vector<8x64xf32>
    %35 = arith.mulf %33, %34 : vector<8x64xf32>
    %36 = arith.addf %30, %35 : vector<8x64xf32>
    %37 = vector.extract_strided_slice %0 {offsets = [0, 6], sizes = [8, 1], strides = [1, 1]} : vector<8x8xf32> to vector<8x1xf32>
    %38 = vector.extract_strided_slice %1 {offsets = [6, 0], sizes = [1, 64], strides = [1, 1]} : vector<8x64xf32> to vector<1x64xf32>
    %39 = vector.broadcast %37 : vector<8x1xf32> to vector<8x64xf32>
    %40 = vector.broadcast %38 : vector<1x64xf32> to vector<8x64xf32>
    %41 = arith.mulf %39, %40 : vector<8x64xf32>
    %42 = arith.addf %36, %41 : vector<8x64xf32>
    %43 = vector.extract_strided_slice %0 {offsets = [0, 7], sizes = [8, 1], strides = [1, 1]} : vector<8x8xf32> to vector<8x1xf32>
    %44 = vector.extract_strided_slice %1 {offsets = [7, 0], sizes = [1, 64], strides = [1, 1]} : vector<8x64xf32> to vector<1x64xf32>
    %45 = vector.broadcast %43 : vector<8x1xf32> to vector<8x64xf32>
    %46 = vector.broadcast %44 : vector<1x64xf32> to vector<8x64xf32>
    %47 = arith.mulf %45, %46 : vector<8x64xf32>
    %48 = arith.addf %42, %47 : vector<8x64xf32>
    %c0_3 = arith.constant 0 : index
    %c0_4 = arith.constant 0 : index
    %49 = vector.load %arg3[%c0_3, %c0_4] : memref<1x64xf32, #tpu.memory_space<vmem>>, vector<1x64xf32>
    %50 = vector.broadcast %49 : vector<1x64xf32> to vector<8x64xf32>
    %51 = arith.addf %48, %50 : vector<8x64xf32>
    %cst = arith.constant 0.000000e+00 : f32
    %52 = vector.broadcast %cst : f32 to vector<8x64xf32>
    %53 = arith.maximumf %51, %52 : vector<8x64xf32>
    %54 = arith.truncf %53 : vector<8x64xf32> to vector<8x64xbf16>
    %c0_5 = arith.constant 0 : index
    %c0_6 = arith.constant 0 : index
    %55 = vector.load %arg4[%c0_5, %c0_6] : memref<64x32xbf16, #tpu.memory_space<vmem>>, vector<64x32xbf16>
    %cst_7 = arith.constant dense<0.000000e+00> : vector<8x32xf32>
    %56 = tpu.matmul %54, %55, %cst_7 {dimension_numbers = #tpu.dot_dimension_numbers<[1], [0], [0], [1], [0, 0, 1, 1], [], []>} : vector<8x64xbf16>, vector<64x32xbf16>, vector<8x32xf32> -> vector<8x32xf32>
    %c0_8 = arith.constant 0 : index
    %c0_9 = arith.constant 0 : index
    %57 = vector.load %arg5[%c0_8, %c0_9] : memref<1x32xf32, #tpu.memory_space<vmem>>, vector<1x32xf32>
    %58 = vector.broadcast %57 : vector<1x32xf32> to vector<8x32xf32>
    %59 = arith.addf %56, %58 : vector<8x32xf32>
    %cst_10 = arith.constant 0.000000e+00 : f32
    %60 = vector.broadcast %cst_10 : f32 to vector<8x32xf32>
    %61 = arith.maximumf %59, %60 : vector<8x32xf32>
    %c0_11 = arith.constant 0 : index
    %c0_12 = arith.constant 0 : index
    %62 = vector.load %arg6[%c0_11, %c0_12] : memref<4x32xf32, #tpu.memory_space<vmem>>, vector<4x32xf32>
    %63 = vector.extract_strided_slice %62 {offsets = [0, 0], sizes = [1, 32], strides = [1, 1]} : vector<4x32xf32> to vector<1x32xf32>
    %64 = vector.broadcast %63 : vector<1x32xf32> to vector<8x32xf32>
    %65 = arith.mulf %61, %64 : vector<8x32xf32>
    %cst_13 = arith.constant dense<0.000000e+00> : vector<8xf32>
    %66 = vector.multi_reduction <add>, %65, %cst_13 [1] : vector<8x32xf32> to vector<8xf32>
    %67 = vector.shape_cast %66 : vector<8xf32> to vector<8x1xf32>
    %68 = vector.extract_strided_slice %62 {offsets = [1, 0], sizes = [1, 32], strides = [1, 1]} : vector<4x32xf32> to vector<1x32xf32>
    %69 = vector.broadcast %68 : vector<1x32xf32> to vector<8x32xf32>
    %70 = arith.mulf %61, %69 : vector<8x32xf32>
    %cst_14 = arith.constant dense<0.000000e+00> : vector<8xf32>
    %71 = vector.multi_reduction <add>, %70, %cst_14 [1] : vector<8x32xf32> to vector<8xf32>
    %72 = vector.shape_cast %71 : vector<8xf32> to vector<8x1xf32>
    %73 = vector.extract_strided_slice %62 {offsets = [2, 0], sizes = [1, 32], strides = [1, 1]} : vector<4x32xf32> to vector<1x32xf32>
    %74 = vector.broadcast %73 : vector<1x32xf32> to vector<8x32xf32>
    %75 = arith.mulf %61, %74 : vector<8x32xf32>
    %cst_15 = arith.constant dense<0.000000e+00> : vector<8xf32>
    %76 = vector.multi_reduction <add>, %75, %cst_15 [1] : vector<8x32xf32> to vector<8xf32>
    %77 = vector.shape_cast %76 : vector<8xf32> to vector<8x1xf32>
    %78 = vector.extract_strided_slice %62 {offsets = [3, 0], sizes = [1, 32], strides = [1, 1]} : vector<4x32xf32> to vector<1x32xf32>
    %79 = vector.broadcast %78 : vector<1x32xf32> to vector<8x32xf32>
    %80 = arith.mulf %61, %79 : vector<8x32xf32>
    %cst_16 = arith.constant dense<0.000000e+00> : vector<8xf32>
    %81 = vector.multi_reduction <add>, %80, %cst_16 [1] : vector<8x32xf32> to vector<8xf32>
    %82 = vector.shape_cast %81 : vector<8xf32> to vector<8x1xf32>
    %83 = tpu.concatenate %67, %72, %77, %82 in 1 : vector<8x1xf32>, vector<8x1xf32>, vector<8x1xf32>, vector<8x1xf32> -> vector<8x4xf32>
    %c0_17 = arith.constant 0 : index
    %c0_18 = arith.constant 0 : index
    %84 = vector.load %arg7[%c0_17, %c0_18] : memref<1x4xf32, #tpu.memory_space<vmem>>, vector<1x4xf32>
    %85 = vector.broadcast %84 : vector<1x4xf32> to vector<8x4xf32>
    %86 = arith.addf %83, %85 : vector<8x4xf32>
    %c0_19 = arith.constant 0 : index
    %c0_20 = arith.constant 0 : index
    %87 = vector.load %arg8[%c0_19, %c0_20] : memref<8x4xf32, #tpu.memory_space<vmem>>, vector<8x4xf32>
    tpu.vector_store %arg8[%c0_19, %c0_20], %86 {strides = array<i32>} : memref<8x4xf32, #tpu.memory_space<vmem>>, vector<8x4xf32>,
    return
  }
  func.func @transform_0(%arg0: i32) -> (i32, i32) {
    %c0_i32 = arith.constant 0 : i32
    %c0_i32_0 = arith.constant 0 : i32
    return %arg0, %c0_i32 : i32, i32
  }
  func.func @transform_1(%arg0: i32) -> (i32, i32) {
    %c0_i32 = arith.constant 0 : i32
    %c0_i32_0 = arith.constant 0 : i32
    %c0_i32_1 = arith.constant 0 : i32
    return %c0_i32, %c0_i32_0 : i32, i32
  }
  func.func @transform_2(%arg0: i32) -> (i32, i32) {
    %c0_i32 = arith.constant 0 : i32
    %c0_i32_0 = arith.constant 0 : i32
    %c0_i32_1 = arith.constant 0 : i32
    return %c0_i32, %c0_i32_0 : i32, i32
  }
  func.func @transform_3(%arg0: i32) -> (i32, i32) {
    %c0_i32 = arith.constant 0 : i32
    %c0_i32_0 = arith.constant 0 : i32
    %c0_i32_1 = arith.constant 0 : i32
    return %c0_i32, %c0_i32_0 : i32, i32
  }
  func.func @transform_4(%arg0: i32) -> (i32, i32) {
    %c0_i32 = arith.constant 0 : i32
    %c0_i32_0 = arith.constant 0 : i32
    %c0_i32_1 = arith.constant 0 : i32
    return %c0_i32, %c0_i32_0 : i32, i32
  }
  func.func @transform_5(%arg0: i32) -> (i32, i32) {
    %c0_i32 = arith.constant 0 : i32
    %c0_i32_0 = arith.constant 0 : i32
    %c0_i32_1 = arith.constant 0 : i32
    return %c0_i32, %c0_i32_0 : i32, i32
  }
  func.func @transform_6(%arg0: i32) -> (i32, i32) {
    %c0_i32 = arith.constant 0 : i32
    %c0_i32_0 = arith.constant 0 : i32
    %c0_i32_1 = arith.constant 0 : i32
    return %c0_i32, %c0_i32_0 : i32, i32
  }
  func.func @transform_7(%arg0: i32) -> (i32, i32) {
    %c0_i32 = arith.constant 0 : i32
    %c0_i32_0 = arith.constant 0 : i32
    return %arg0, %c0_i32 : i32, i32
  }
}

</mosaic_0001>

<bundles_post_ra>
// kernel: _qnet_forward_impl.1
= control target key start
LH: loop header
LB: loop body
LE: loop exit
PB: predicated region body
PF: predicated region fallthrough
CT: control target
= control target key end

     0   :  { %v226_v0 = vmov 0   ;;  %v227_v1 = vmov 2   ;;  %v228_v3 = vmov 4   ;;  %v229_v4 = vmov 1   ;;  %s307_s0 = inlined_call_operand.vmem [shape: f32[8,8], index: 0, kind: input, shape index: {}]   ;;  %s308_s2 = inlined_call_operand.vmem [shape: f32[1,64], index: 2, kind: input, shape index: {}]   ;;  %s309_s4 = inlined_call_operand.vmem [shape: f32[1,32], index: 4, kind: input, shape index: {}]   ;;  %s310_s3 = inlined_call_operand.vmem [shape: bf16[64,32], index: 3, kind: input, shape index: {}]   ;;  %s311_s1 = inlined_call_operand.vmem [shape: f32[8,64], index: 1, kind: input, shape index: {}]   ;;  %s312_s5 = inlined_call_operand.vmem [shape: f32[4,32], index: 5, kind: input, shape index: {}]   ;;  %s313_s6 = inlined_call_operand.vmem [shape: f32[1,4], index: 6, kind: input, shape index: {}]   ;;  %s314_s7 = inlined_call_operand.vmem [shape: f32[8,4], index: 7, kind: output, shape index: {}]  }
   0x1   :  { %214 = vset.pattern.permute.xlu0 %v226_v0  ;;  %216 = vset.pattern.permute.xlu1 %v227_v1  ;;  %v27_v2 = vld [vmem:[%s307_s0] sm:$0xff]  ;;  %v230_v5 = vmov 3   ;;  %v231_v6 = vmov 5   ;;  %v232_v7 = vmov 6   ;;  %v233_v8 = vmov 7   ;;  %v205_v9 = vld [vmem:[%s310_s3 + $0x18] sm:$0xff] }
   0x2   :  { %31 = vperm.xlu0 %214, %v27_v2   ;;  %44 = vperm.xlu1 %216, %v27_v2   ;;  %v204_v10 = vld [vmem:[%s310_s3 + $0x10] sm:$0xff]  ;;  %v203_v11 = vld [vmem:[%s310_s3 + $0x8] sm:$0xff]  ;;  %v202_v12 = vld [vmem:[%s310_s3] sm:$0xff]  ;;  %vm128_vm0 = vcmask 523264   ;;  %vm149_vm1 = vcmask 261120   ;;  %vm168_vm2 = vcmask 7168  }
   0x3   :  { %218 = vset.pattern.permute.xlu2 %v228_v3  ;;  %136 = vmatpush.bf16.msra.mxu0 %v205_v9  ;;  %v28_v16 = vld [vmem:[%s311_s1] sm:$0xff]  ;;  %vm170_vm3 = vcmask 15360   ;;  %vm172_vm4 = vcmask 23552   ;;  %vm179_vm5 = vcmask 31744  }
   0x4   :  { %58 = vperm.xlu2 %218, %v27_v2   ;;  %v34_v17 = vperm.slane %v28_v16, 0  ;;  %v40_v18 = vperm.slane %v28_v16, 1  ;;  %v47_v20 = vperm.slane %v28_v16, 2  ;;  %v54_v25 = vperm.slane %v28_v16, 3  ;;  %v223_v44 = vld [vmem:[%s308_s2] ss:$0 sm:$0xff] }
   0x5   :  { %v61_v27 = vperm.slane %v28_v16, 4  ;;  %v68_v31 = vperm.slane %v28_v16, 5  ;;  %v75_v32 = vperm.slane %v28_v16, 6  ;;  %v82_v35 = vperm.slane %v28_v16, 7  ;;  %v224_v49 = vld [vmem:[%s309_s4] ss:$0 sm:$0xff] }
   0x6   :  { %v146_v50 = vld [vmem:[%s312_s5] sm:$0xf] }
   0x7   :  { %137 = vmatpush.bf16.msra.mxu0 %v204_v10  ;;  %v158_v53 = vperm.slane %v146_v50, 2  ;;  %v153_v54 = vperm.slane %v146_v50, 1  ;;  %v147_v55 = vperm.slane %v146_v50, 0  ;;  %v163_v63 = vperm.slane %v146_v50, 3 }
   0xa   :  { %215 = vset.pattern.permute.xlu0 %v229_v4  ;;  %217 = vset.pattern.permute.xlu1 %v230_v5 }
   0xb   :  { %37 = vperm.xlu0 %215, %v27_v2   ;;  %51 = vperm.xlu1 %217, %v27_v2  }
   0xc   :  { %219 = vset.pattern.permute.xlu2 %v231_v6  ;;  %138 = vmatpush.bf16.msra.mxu0 %v203_v11 }
   0xd   :  { %65 = vperm.xlu2 %219, %v27_v2  }
  0x10   :  { %139 = vmatpush.bf16.msra.mxu0 %v202_v12 }
  0x13   :  { %220 = vset.pattern.permute.xlu1 %v232_v7  ;;  %222 = vset.pattern.permute.xlu0 %v233_v8  ;;  %v225_v7 = vld [vmem:[%s313_s6] ss:$0 sm:$0xff] }
  0x14   :  { %72 = vperm.xlu1 %220, %v27_v2  }
  0x15   :  { %221 = vset.pattern.permute.xlu2 %v233_v8 }
  0x16   :  { %79 = vperm.xlu2 %221, %v27_v2  }
  0x5e   :  { %v59_v13 = vpop.permute.xlu2 %58 }
  0x5f   :  { %v62_v33 = vmul.f32 %v61_v27, %v59_v13 }
  0x67   :  { %v66_v19 = vpop.permute.xlu2 %65 }
  0x68   :  { %v69_v38 = vmul.f32 %v68_v31, %v66_v19 }
  0x70   :  { %v80_v36 = vpop.permute.xlu2 %79 }
  0x71   :  { %v83_v42 = vmul.f32 %v82_v35, %v80_v36 }
  0x74   :  { %v32_v14 = vpop.permute.xlu0 %31  ;;  %v45_v15 = vpop.permute.xlu1 %44 }
  0x75   :  { %v35_v23 = vmul.f32 %v34_v17, %v32_v14  ;;  %v48_v26 = vmul.f32 %v47_v20, %v45_v15 }
  0x7d   :  { %v38_v21 = vpop.permute.xlu0 %37  ;;  %v52_v22 = vpop.permute.xlu1 %51 }
  0x7e   :  { %v41_v24 = vmul.f32 %v40_v18, %v38_v21  ;;  %v55_v30 = vmul.f32 %v54_v25, %v52_v22 }
  0x80   :  { %v42_v28 = vadd.f32 %v41_v24, %v35_v23 }
  0x82   :  { %v49_v29 = vadd.f32 %v48_v26, %v42_v28 }
  0x84   :  { %v56_v34 = vadd.f32 %v55_v30, %v49_v29 }
  0x86   :  { %v63_v37 = vadd.f32 %v62_v33, %v56_v34  ;;  %v73_v39 = vpop.permute.xlu1 %72 }
  0x87   :  { %v76_v40 = vmul.f32 %v75_v32, %v73_v39 }
  0x88   :  { %v70_v41 = vadd.f32 %v69_v38, %v63_v37 }
  0x8a   :  { %v77_v43 = vadd.f32 %v76_v40, %v70_v41 }
  0x8c   :  { %v84_v45 = vadd.f32 %v83_v42, %v77_v43 }
  0x8e   :  { %v89_v46 = vadd.f32 %v223_v44, %v84_v45 }
  0x90   :  { %v90_v47 = vmax.f32 %v89_v46, 0.0 }
  0x92   :  { %v91_v48 = vpack.c.bf16 %v90_v47, %v90_v47 }
  0x94   :  { %201 = vmatmul.msk.bf16.vlgmr.msra.gmra.mxu0 %vm128_vm0, %v91_v48 }
 0x111   :  { %v141_v51 = vpop.f32.mrf.mxu0 }
 0x112   :  { %v142_v52 = vadd.f32 %v224_v49, %v141_v51 }
 0x114   :  { %v145_v56 = vmax.f32 %v142_v52, 0.0 }
 0x116   :  { %v159_v57 = vmul.f32 %v158_v53, %v145_v56  ;;  %v154_v58 = vmul.f32 %v153_v54, %v145_v56  ;;  %v148_v59 = vmul.f32 %v147_v55, %v145_v56  ;;  %v164_v1 = vmul.f32 %v163_v63, %v145_v56 }
 0x118   :  { %v160_v60 = vsel %vm149_vm1, %v159_v57, 0.0  ;;  %v155_v61 = vsel %vm149_vm1, %v154_v58, 0.0  ;;  %v150_v62 = vsel %vm149_vm1, %v148_v59, 0.0  ;;  %v165_v2 = vsel %vm149_vm1, %v164_v1, 0.0 }
 0x119   :  { %v143_v0 = vpop.f32.mrf.mxu0  ;;  %161 = vadd.xlane.f32.xlu2 %v160_v60  ;;  %156 = vadd.xlane.f32.xlu1 %v155_v61 }
 0x11a   :  { %151 = vadd.xlane.f32.xlu0 %v150_v62 }
 0x121   :  { %166 = vadd.xlane.f32.xlu2 %v165_v2 }
 0x18c   :  { %v162_v3 = vpop.xlane.xlu2 %161  ;;  %v157_v4 = vpop.xlane.xlu1 %156 }
 0x18d   :  { %v152_v5 = vpop.xlane.xlu0 %151 }
 0x18e   :  { %v169_v6 = vsel %vm168_vm2, %v152_v5, %v157_v4 }
 0x18f   :  { %v171_v9 = vsel %vm170_vm3, %v169_v6, %v162_v3 }
 0x194   :  { %v167_v8 = vpop.xlane.xlu2 %166 }
 0x195   :  { %v173_v10 = vsel %vm172_vm4, %v171_v9, %v167_v8 }
 0x196   :  { %v178_v11 = vadd.f32 %v225_v7, %v173_v10 }
 0x198   :  { %180 = vst.msk [vmem:[%s314_s7] sm:$0xff] %vm179_vm5, %v178_v11 }

</bundles_post_ra>
